<compile_context>
chip_gen: v6e
topology: v6e:2x2x1
jax: 0.10.0
libtpu: 0.0.40
codegen_flags: <defaults>
</compile_context>

<pallas_src>
import functools

import jax
import jax.numpy as jnp
from jax.experimental import pallas as pl
from jax.experimental.pallas import tpu as pltpu

LAYER_DIMS = (768, 256, 128, 64, 32, 16, 4, 2)
NUM_LAYERS = len(LAYER_DIMS) - 1  # 7 Linear + Tanh layers
OUT_PAD = 128                     # lane-dense padded width of the last layer


def _round_up(x, m):
    return (x + m - 1) // m * m


def _encoder_kernel(x_ref, *refs):
    """One batch tile of the whole MLP: 7 x (bf16 matmul + f32 bias + tanh).

    refs = (w1, b1, ..., w7, b7, out_ref); weights are bf16 (in, out),
    biases f32 (1, out), the last layer is pre-padded to OUT_PAD lanes.
    """
    out_ref = refs[-1]
    param_refs = refs[:-1]

    h = x_ref[...]  # bf16 (tm, 768) straight from the pipelined DMA
    for layer in range(NUM_LAYERS):
        w = param_refs[2 * layer][...]        # bf16 (in, out) -> native MXU rate
        b = param_refs[2 * layer + 1][...]    # f32  (1, out)
        acc = jnp.dot(h.astype(jnp.bfloat16), w,
                      preferred_element_type=jnp.float32) + b
        h = jnp.tanh(acc)                     # f32 activations (EUP)
        # TODO(synk): the 16->4->2 tail layers could run on the VPU
        # (broadcast-mul + lane reduce) to skip MXU latency at tiny widths.
    out_ref[...] = h.astype(out_ref.dtype)    # (tm, 128) lane-dense store


def _resident_spec(arr):
    # Full-array block, constant block index -> stays resident in VMEM.
    return pl.BlockSpec(arr.shape, lambda i: (0,) * arr.ndim)


@functools.partial(jax.jit, static_argnames=("tm",))
def ae_encoder_forward(x, params, *, tm=256):
    """params: flat tuple (w1, b1, ..., w7, b7), w_i f32 (in, out), b_i f32 (1, out)."""
    batch = x.shape[0]
    in_dim = LAYER_DIMS[0]
    out_dim = LAYER_DIMS[-1]

    # Batch tiling: keep TM at <=256 rows (multiple of 8), pad batch so the
    # grid divides evenly; padded tail rows are sliced off below.
    tm = min(tm, _round_up(max(batch, 8), 8))
    padded_batch = _round_up(batch, tm)

    x_bf16 = x.astype(jnp.bfloat16)
    if padded_batch != batch:
        x_bf16 = jnp.pad(x_bf16, ((0, padded_batch - batch), (0, 0)))

    # bf16 weights (MXU-native), f32 biases; final layer zero-padded to 128
    # lanes so the output writeback is an unmasked, lane-dense store.
    kernel_params = []
    for i in range(NUM_LAYERS):
        w = params[2 * i].astype(jnp.bfloat16)
        b = params[2 * i + 1].astype(jnp.float32)
        if i == NUM_LAYERS - 1:
            w = jnp.pad(w, ((0, 0), (0, OUT_PAD - w.shape[1])))
            b = jnp.pad(b, ((0, 0), (0, OUT_PAD - b.shape[1])))
        kernel_params.extend([w, b])

    in_specs = [pl.BlockSpec((tm, in_dim), lambda i: (i, 0))]
    in_specs += [_resident_spec(p) for p in kernel_params]

    flops_per_row = 2 * sum(
        LAYER_DIMS[i] * LAYER_DIMS[i + 1] for i in range(NUM_LAYERS))
    trans_per_row = sum(LAYER_DIMS[1:])
    weight_bytes = sum(int(p.size) * p.dtype.itemsize for p in kernel_params)
    cost = pl.CostEstimate(
        flops=flops_per_row * padded_batch,
        transcendentals=trans_per_row * padded_batch,
        bytes_accessed=padded_batch * in_dim * 2          # bf16 x
        + padded_batch * OUT_PAD * 4                      # f32 padded out
        + weight_bytes)

    out_padded = pl.pallas_call(
        _encoder_kernel,
        out_shape=jax.ShapeDtypeStruct((padded_batch, OUT_PAD), jnp.float32),
        grid=(padded_batch // tm,),
        in_specs=in_specs,
        out_specs=pl.BlockSpec((tm, OUT_PAD), lambda i: (i, 0)),
        compiler_params=pltpu.CompilerParams(
            dimension_semantics=("parallel",)),
        cost_estimate=cost,
    )(x_bf16, *kernel_params)

    return out_padded[:batch, :out_dim]


def init_params(key):
    """Deterministic parameter init matching nn.Linear shapes (synthetic)."""
    params = []
    for i in range(NUM_LAYERS):
        fan_in, fan_out = LAYER_DIMS[i], LAYER_DIMS[i + 1]
        key, wk, bk = jax.random.split(key, 3)
        bound = 1.0 / jnp.sqrt(fan_in)
        # PyTorch Linear weight is (out, in); we store the transpose (in, out).
        w = jax.random.uniform(
            wk, (fan_in, fan_out), jnp.float32, minval=-bound, maxval=bound)
        b = jax.random.uniform(
            bk, (1, fan_out), jnp.float32, minval=-bound, maxval=bound)
        params.extend([w, b])
    return tuple(params)


def reference_forward(x, params):
    """Pure-JAX f32 reference for correctness check."""
    h = x
    for i in range(NUM_LAYERS):
        w, b = params[2 * i], params[2 * i + 1]
        h = jnp.tanh(h @ w + b)
    return h


if __name__ == "__main__":
    key = jax.random.PRNGKey(0)
    key, xk, pk = jax.random.split(key, 3)
    params = init_params(pk)

    # bf16 matmuls with f32 accumulation -> relax tolerance vs the f32 reference.
    tol = dict(atol=2e-2, rtol=2e-2)

    # Small demo batch (single grid step, tm shrinks to 8).
    batch = 8
    x = jax.random.normal(xk, (batch, LAYER_DIMS[0]), jnp.float32)
    out = jax.block_until_ready(ae_encoder_forward(x, params))
    ref = reference_forward(x, params)
    assert out.shape == (batch, LAYER_DIMS[-1]), out.shape
    assert jnp.allclose(out, ref, **tol), (
        f"max abs err {jnp.max(jnp.abs(out - ref))}")

    # Larger batch exercising the multi-step grid + tail padding path.
    key, xk2 = jax.random.split(key)
    batch2 = 300
    x2 = jax.random.normal(xk2, (batch2, LAYER_DIMS[0]), jnp.float32)
    out2 = jax.block_until_ready(ae_encoder_forward(x2, params))
    ref2 = reference_forward(x2, params)
    assert out2.shape == (batch2, LAYER_DIMS[-1]), out2.shape
    assert jnp.allclose(out2, ref2, **tol), (
        f"max abs err {jnp.max(jnp.abs(out2 - ref2))}")

    print("KERNEL_OK")
</pallas_src>

<mosaic_0001>
module attributes {stable_mosaic.version = 11 : i64} {
  func.func @_encoder_kernel(%arg0: i32, %arg1: memref<8x768xbf16, #tpu.memory_space<vmem>>, %arg2: memref<768x256xbf16, #tpu.memory_space<vmem>>, %arg3: memref<1x256xf32, #tpu.memory_space<vmem>>, %arg4: memref<256x128xbf16, #tpu.memory_space<vmem>>, %arg5: memref<1x128xf32, #tpu.memory_space<vmem>>, %arg6: memref<128x64xbf16, #tpu.memory_space<vmem>>, %arg7: memref<1x64xf32, #tpu.memory_space<vmem>>, %arg8: memref<64x32xbf16, #tpu.memory_space<vmem>>, %arg9: memref<1x32xf32, #tpu.memory_space<vmem>>, %arg10: memref<32x16xbf16, #tpu.memory_space<vmem>>, %arg11: memref<1x16xf32, #tpu.memory_space<vmem>>, %arg12: memref<16x4xbf16, #tpu.memory_space<vmem>>, %arg13: memref<1x4xf32, #tpu.memory_space<vmem>>, %arg14: memref<4x128xbf16, #tpu.memory_space<vmem>>, %arg15: memref<1x128xf32, #tpu.memory_space<vmem>>, %arg16: memref<8x128xf32, #tpu.memory_space<vmem>>) attributes {dimension_semantics = [#tpu.dimension_semantics<parallel>], iteration_bounds = array<i64: 1>, scalar_prefetch = 0 : i64, scratch_operands = 0 : i64, tpu.core_type = #tpu.core_type<tc>, window_params = [{transform_indices = @transform_0, window_bounds = array<i64: 8, 768>}, {pipeline_mode = #tpu.pipeline_mode<synchronous>, transform_indices = @transform_1, window_bounds = array<i64: 768, 256>}, {pipeline_mode = #tpu.pipeline_mode<synchronous>, transform_indices = @transform_2, window_bounds = array<i64: 1, 256>}, {pipeline_mode = #tpu.pipeline_mode<synchronous>, transform_indices = @transform_3, window_bounds = array<i64: 256, 128>}, {pipeline_mode = #tpu.pipeline_mode<synchronous>, transform_indices = @transform_4, window_bounds = array<i64: 1, 128>}, {pipeline_mode = #tpu.pipeline_mode<synchronous>, transform_indices = @transform_5, window_bounds = array<i64: 128, 64>}, {pipeline_mode = #tpu.pipeline_mode<synchronous>, transform_indices = @transform_6, window_bounds = array<i64: 1, 64>}, {pipeline_mode = #tpu.pipeline_mode<synchronous>, transform_indices = @transform_7, window_bounds = array<i64: 64, 32>}, {pipeline_mode = #tpu.pipeline_mode<synchronous>, transform_indices = @transform_8, window_bounds = array<i64: 1, 32>}, {pipeline_mode = #tpu.pipeline_mode<synchronous>, transform_indices = @transform_9, window_bounds = array<i64: 32, 16>}, {pipeline_mode = #tpu.pipeline_mode<synchronous>, transform_indices = @transform_10, window_bounds = array<i64: 1, 16>}, {pipeline_mode = #tpu.pipeline_mode<synchronous>, transform_indices = @transform_11, window_bounds = array<i64: 16, 4>}, {pipeline_mode = #tpu.pipeline_mode<synchronous>, transform_indices = @transform_12, window_bounds = array<i64: 1, 4>}, {pipeline_mode = #tpu.pipeline_mode<synchronous>, transform_indices = @transform_13, window_bounds = array<i64: 4, 128>}, {pipeline_mode = #tpu.pipeline_mode<synchronous>, transform_indices = @transform_14, window_bounds = array<i64: 1, 128>}, {transform_indices = @transform_15, window_bounds = array<i64: 8, 128>}]} {
    %c0 = arith.constant 0 : index
    %c0_0 = arith.constant 0 : index
    %0 = vector.load %arg1[%c0, %c0_0] : memref<8x768xbf16, #tpu.memory_space<vmem>>, vector<8x768xbf16>
    %c0_1 = arith.constant 0 : index
    %c0_2 = arith.constant 0 : index
    %1 = vector.load %arg2[%c0_1, %c0_2] : memref<768x256xbf16, #tpu.memory_space<vmem>>, vector<768x256xbf16>
    %c0_3 = arith.constant 0 : index
    %c0_4 = arith.constant 0 : index
    %2 = vector.load %arg3[%c0_3, %c0_4] : memref<1x256xf32, #tpu.memory_space<vmem>>, vector<1x256xf32>
    %cst = arith.constant dense<0.000000e+00> : vector<8x256xf32>
    %3 = tpu.matmul %0, %1, %cst {dimension_numbers = #tpu.dot_dimension_numbers<[1], [0], [0], [1], [0, 0, 1, 1], [], []>} : vector<8x768xbf16>, vector<768x256xbf16>, vector<8x256xf32> -> vector<8x256xf32>
    %4 = vector.broadcast %2 : vector<1x256xf32> to vector<8x256xf32>
    %5 = arith.addf %3, %4 : vector<8x256xf32>
    %6 = math.tanh %5 : vector<8x256xf32>
    %c0_5 = arith.constant 0 : index
    %c0_6 = arith.constant 0 : index
    %7 = vector.load %arg4[%c0_5, %c0_6] : memref<256x128xbf16, #tpu.memory_space<vmem>>, vector<256x128xbf16>
    %c0_7 = arith.constant 0 : index
    %c0_8 = arith.constant 0 : index
    %8 = vector.load %arg5[%c0_7, %c0_8] : memref<1x128xf32, #tpu.memory_space<vmem>>, vector<1x128xf32>
    %9 = arith.truncf %6 : vector<8x256xf32> to vector<8x256xbf16>
    %cst_9 = arith.constant dense<0.000000e+00> : vector<8x128xf32>
    %10 = tpu.matmul %9, %7, %cst_9 {dimension_numbers = #tpu.dot_dimension_numbers<[1], [0], [0], [1], [0, 0, 1, 1], [], []>} : vector<8x256xbf16>, vector<256x128xbf16>, vector<8x128xf32> -> vector<8x128xf32>
    %11 = vector.broadcast %8 : vector<1x128xf32> to vector<8x128xf32>
    %12 = arith.addf %10, %11 : vector<8x128xf32>
    %13 = math.tanh %12 : vector<8x128xf32>
    %c0_10 = arith.constant 0 : index
    %c0_11 = arith.constant 0 : index
    %14 = vector.load %arg6[%c0_10, %c0_11] : memref<128x64xbf16, #tpu.memory_space<vmem>>, vector<128x64xbf16>
    %c0_12 = arith.constant 0 : index
    %c0_13 = arith.constant 0 : index
    %15 = vector.load %arg7[%c0_12, %c0_13] : memref<1x64xf32, #tpu.memory_space<vmem>>, vector<1x64xf32>
    %16 = arith.truncf %13 : vector<8x128xf32> to vector<8x128xbf16>
    %cst_14 = arith.constant dense<0.000000e+00> : vector<8x64xf32>
    %17 = tpu.matmul %16, %14, %cst_14 {dimension_numbers = #tpu.dot_dimension_numbers<[1], [0], [0], [1], [0, 0, 1, 1], [], []>} : vector<8x128xbf16>, vector<128x64xbf16>, vector<8x64xf32> -> vector<8x64xf32>
    %18 = vector.broadcast %15 : vector<1x64xf32> to vector<8x64xf32>
    %19 = arith.addf %17, %18 : vector<8x64xf32>
    %20 = math.tanh %19 : vector<8x64xf32>
    %c0_15 = arith.constant 0 : index
    %c0_16 = arith.constant 0 : index
    %21 = vector.load %arg8[%c0_15, %c0_16] : memref<64x32xbf16, #tpu.memory_space<vmem>>, vector<64x32xbf16>
    %c0_17 = arith.constant 0 : index
    %c0_18 = arith.constant 0 : index
    %22 = vector.load %arg9[%c0_17, %c0_18] : memref<1x32xf32, #tpu.memory_space<vmem>>, vector<1x32xf32>
    %23 = arith.truncf %20 : vector<8x64xf32> to vector<8x64xbf16>
    %cst_19 = arith.constant dense<0.000000e+00> : vector<8x32xf32>
    %24 = tpu.matmul %23, %21, %cst_19 {dimension_numbers = #tpu.dot_dimension_numbers<[1], [0], [0], [1], [0, 0, 1, 1], [], []>} : vector<8x64xbf16>, vector<64x32xbf16>, vector<8x32xf32> -> vector<8x32xf32>
    %25 = vector.broadcast %22 : vector<1x32xf32> to vector<8x32xf32>
    %26 = arith.addf %24, %25 : vector<8x32xf32>
    %27 = math.tanh %26 : vector<8x32xf32>
    %c0_20 = arith.constant 0 : index
    %c0_21 = arith.constant 0 : index
    %28 = vector.load %arg10[%c0_20, %c0_21] : memref<32x16xbf16, #tpu.memory_space<vmem>>, vector<32x16xbf16>
    %c0_22 = arith.constant 0 : index
    %c0_23 = arith.constant 0 : index
    %29 = vector.load %arg11[%c0_22, %c0_23] : memref<1x16xf32, #tpu.memory_space<vmem>>, vector<1x16xf32>
    %30 = arith.truncf %27 : vector<8x32xf32> to vector<8x32xbf16>
    %cst_24 = arith.constant dense<0.000000e+00> : vector<8x16xf32>
    %31 = tpu.matmul %30, %28, %cst_24 {dimension_numbers = #tpu.dot_dimension_numbers<[1], [0], [0], [1], [0, 0, 1, 1], [], []>} : vector<8x32xbf16>, vector<32x16xbf16>, vector<8x16xf32> -> vector<8x16xf32>
    %32 = vector.broadcast %29 : vector<1x16xf32> to vector<8x16xf32>
    %33 = arith.addf %31, %32 : vector<8x16xf32>
    %34 = math.tanh %33 : vector<8x16xf32>
    %c0_25 = arith.constant 0 : index
    %c0_26 = arith.constant 0 : index
    %35 = vector.load %arg12[%c0_25, %c0_26] : memref<16x4xbf16, #tpu.memory_space<vmem>>, vector<16x4xbf16>
    %c0_27 = arith.constant 0 : index
    %c0_28 = arith.constant 0 : index
    %36 = vector.load %arg13[%c0_27, %c0_28] : memref<1x4xf32, #tpu.memory_space<vmem>>, vector<1x4xf32>
    %37 = arith.truncf %34 : vector<8x16xf32> to vector<8x16xbf16>
    %cst_29 = arith.constant dense<0.000000e+00> : vector<8x4xf32>
    %38 = tpu.matmul %37, %35, %cst_29 {dimension_numbers = #tpu.dot_dimension_numbers<[1], [0], [0], [1], [0, 0, 1, 1], [], []>} : vector<8x16xbf16>, vector<16x4xbf16>, vector<8x4xf32> -> vector<8x4xf32>
    %39 = vector.broadcast %36 : vector<1x4xf32> to vector<8x4xf32>
    %40 = arith.addf %38, %39 : vector<8x4xf32>
    %41 = math.tanh %40 : vector<8x4xf32>
    %c0_30 = arith.constant 0 : index
    %c0_31 = arith.constant 0 : index
    %42 = vector.load %arg14[%c0_30, %c0_31] : memref<4x128xbf16, #tpu.memory_space<vmem>>, vector<4x128xbf16>
    %c0_32 = arith.constant 0 : index
    %c0_33 = arith.constant 0 : index
    %43 = vector.load %arg15[%c0_32, %c0_33] : memref<1x128xf32, #tpu.memory_space<vmem>>, vector<1x128xf32>
    %44 = arith.truncf %41 : vector<8x4xf32> to vector<8x4xbf16>
    %cst_34 = arith.constant dense<0.000000e+00> : vector<8x128xf32>
    %45 = tpu.matmul %44, %42, %cst_34 {dimension_numbers = #tpu.dot_dimension_numbers<[1], [0], [0], [1], [0, 0, 1, 1], [], []>} : vector<8x4xbf16>, vector<4x128xbf16>, vector<8x128xf32> -> vector<8x128xf32>
    %46 = vector.broadcast %43 : vector<1x128xf32> to vector<8x128xf32>
    %47 = arith.addf %45, %46 : vector<8x128xf32>
    %48 = math.tanh %47 : vector<8x128xf32>
    %c0_35 = arith.constant 0 : index
    %c0_36 = arith.constant 0 : index
    %49 = vector.load %arg16[%c0_35, %c0_36] : memref<8x128xf32, #tpu.memory_space<vmem>>, vector<8x128xf32>
    tpu.vector_store %arg16[%c0_35, %c0_36], %48 {strides = array<i32>} : memref<8x128xf32, #tpu.memory_space<vmem>>, vector<8x128xf32>,
    return
  }
  func.func @transform_0(%arg0: i32) -> (i32, i32) {
    %c0_i32 = arith.constant 0 : i32
    %c0_i32_0 = arith.constant 0 : i32
    return %arg0, %c0_i32 : i32, i32
  }
  func.func @transform_1(%arg0: i32) -> (i32, i32) {
    %c0_i32 = arith.constant 0 : i32
    %c0_i32_0 = arith.constant 0 : i32
    %c0_i32_1 = arith.constant 0 : i32
    return %c0_i32, %c0_i32_0 : i32, i32
  }
  func.func @transform_2(%arg0: i32) -> (i32, i32) {
    %c0_i32 = arith.constant 0 : i32
    %c0_i32_0 = arith.constant 0 : i32
    %c0_i32_1 = arith.constant 0 : i32
    return %c0_i32, %c0_i32_0 : i32, i32
  }
  func.func @transform_3(%arg0: i32) -> (i32, i32) {
    %c0_i32 = arith.constant 0 : i32
    %c0_i32_0 = arith.constant 0 : i32
    %c0_i32_1 = arith.constant 0 : i32
    return %c0_i32, %c0_i32_0 : i32, i32
  }
  func.func @transform_4(%arg0: i32) -> (i32, i32) {
    %c0_i32 = arith.constant 0 : i32
    %c0_i32_0 = arith.constant 0 : i32
    %c0_i32_1 = arith.constant 0 : i32
    return %c0_i32, %c0_i32_0 : i32, i32
  }
  func.func @transform_5(%arg0: i32) -> (i32, i32) {
    %c0_i32 = arith.constant 0 : i32
    %c0_i32_0 = arith.constant 0 : i32
    %c0_i32_1 = arith.constant 0 : i32
    return %c0_i32, %c0_i32_0 : i32, i32
  }
  func.func @transform_6(%arg0: i32) -> (i32, i32) {
    %c0_i32 = arith.constant 0 : i32
    %c0_i32_0 = arith.constant 0 : i32
    %c0_i32_1 = arith.constant 0 : i32
    return %c0_i32, %c0_i32_0 : i32, i32
  }
  func.func @transform_7(%arg0: i32) -> (i32, i32) {
    %c0_i32 = arith.constant 0 : i32
    %c0_i32_0 = arith.constant 0 : i32
    %c0_i32_1 = arith.constant 0 : i32
    return %c0_i32, %c0_i32_0 : i32, i32
  }
  func.func @transform_8(%arg0: i32) -> (i32, i32) {
    %c0_i32 = arith.constant 0 : i32
    %c0_i32_0 = arith.constant 0 : i32
    %c0_i32_1 = arith.constant 0 : i32
    return %c0_i32, %c0_i32_0 : i32, i32
  }
  func.func @transform_9(%arg0: i32) -> (i32, i32) {
    %c0_i32 = arith.constant 0 : i32
    %c0_i32_0 = arith.constant 0 : i32
    %c0_i32_1 = arith.constant 0 : i32
    return %c0_i32, %c0_i32_0 : i32, i32
  }
  func.func @transform_10(%arg0: i32) -> (i32, i32) {
    %c0_i32 = arith.constant 0 : i32
    %c0_i32_0 = arith.constant 0 : i32
    %c0_i32_1 = arith.constant 0 : i32
    return %c0_i32, %c0_i32_0 : i32, i32
  }
  func.func @transform_11(%arg0: i32) -> (i32, i32) {
    %c0_i32 = arith.constant 0 : i32
    %c0_i32_0 = arith.constant 0 : i32
    %c0_i32_1 = arith.constant 0 : i32
    return %c0_i32, %c0_i32_0 : i32, i32
  }
  func.func @transform_12(%arg0: i32) -> (i32, i32) {
    %c0_i32 = arith.constant 0 : i32
    %c0_i32_0 = arith.constant 0 : i32
    %c0_i32_1 = arith.constant 0 : i32
    return %c0_i32, %c0_i32_0 : i32, i32
  }
  func.func @transform_13(%arg0: i32) -> (i32, i32) {
    %c0_i32 = arith.constant 0 : i32
    %c0_i32_0 = arith.constant 0 : i32
    %c0_i32_1 = arith.constant 0 : i32
    return %c0_i32, %c0_i32_0 : i32, i32
  }
  func.func @transform_14(%arg0: i32) -> (i32, i32) {
    %c0_i32 = arith.constant 0 : i32
    %c0_i32_0 = arith.constant 0 : i32
    %c0_i32_1 = arith.constant 0 : i32
    return %c0_i32, %c0_i32_0 : i32, i32
  }
  func.func @transform_15(%arg0: i32) -> (i32, i32) {
    %c0_i32 = arith.constant 0 : i32
    %c0_i32_0 = arith.constant 0 : i32
    return %arg0, %c0_i32 : i32, i32
  }
}

</mosaic_0001>

<bundles_post_ra>
// kernel: ae_encoder_forward.1
= control target key start
LH: loop header
LB: loop body
LE: loop exit
PB: predicated region body
PF: predicated region fallthrough
CT: control target
= control target key end

     0   :  { %vm1795_vm0 = vmmov 0   ;;  %vm1119_vm1 = vcmask 523264   ;;  %vm1188_vm2 = vcmask 261120   ;;  %vm1249_vm3 = vcmask 130048   ;;  %s2325_s1 = inlined_call_operand.vmem [shape: bf16[768,256], index: 1, kind: input, shape index: {}]   ;;  %s2326_s0 = inlined_call_operand.vmem [shape: bf16[8,768], index: 0, kind: input, shape index: {}]   ;;  %s2327_s3 = inlined_call_operand.vmem [shape: bf16[256,128], index: 3, kind: input, shape index: {}]   ;;  %s2328_s5 = inlined_call_operand.vmem [shape: bf16[128,64], index: 5, kind: input, shape index: {}]   ;;  %s2329_s2 = inlined_call_operand.vmem [shape: f32[1,256], index: 2, kind: input, shape index: {}]   ;;  %s2330_s4 = inlined_call_operand.vmem [shape: f32[1,128], index: 4, kind: input, shape index: {}]   ;;  %s2331_s7 = inlined_call_operand.vmem [shape: bf16[64,32], index: 7, kind: input, shape index: {}]   ;;  %s2332_s6 = inlined_call_operand.vmem [shape: f32[1,64], index: 6, kind: input, shape index: {}]   ;;  %s2333_s9 = inlined_call_operand.vmem [shape: bf16[32,16], index: 9, kind: input, shape index: {}]   ;;  %s2334_s8 = inlined_call_operand.vmem [shape: f32[1,32], index: 8, kind: input, shape index: {}]   ;;  %s2335_s11 = inlined_call_operand.vmem [shape: bf16[16,4], index: 11, kind: input, shape index: {}]   ;;  %s2336_s10 = inlined_call_operand.vmem [shape: f32[1,16], index: 10, kind: input, shape index: {}]   ;;  %s2337_s13 = inlined_call_operand.vmem [shape: bf16[4,128], index: 13, kind: input, shape index: {}]   ;;  %s2338_s12 = inlined_call_operand.vmem [shape: f32[1,4], index: 12, kind: input, shape index: {}]   ;;  %s2339_s14 = inlined_call_operand.vmem [shape: f32[1,128], index: 14, kind: input, shape index: {}]   ;;  %s2340_s15 = inlined_call_operand.vmem [shape: f32[8,128], index: 15, kind: output, shape index: {}]  }
   0x1   :  { %v1597_v0 = vld [vmem:[%s2325_s1 + $0x74] ss:$8 sps:$4 sm:$0xff]   ;;  %v1599_v1 = vld [vmem:[%s2325_s1 + $0x70] ss:$8 sps:$4 sm:$0xff]   ;;  %v1603_v4 = vld [vmem:[%s2325_s1 + $0x64] ss:$8 sps:$4 sm:$0xff]  }
   0x2   :  { %663 = vmatprep.subr.bf16.mxu0 %v1597_v0  ;;  %v1600_v2 = vld [vmem:[%s2325_s1 + $0x174] ss:$8 sps:$4 sm:$0xff]   ;;  %v1602_v3 = vld [vmem:[%s2325_s1 + $0x170] ss:$8 sps:$4 sm:$0xff]   ;;  %v1605_v5 = vld [vmem:[%s2325_s1 + $0x60] ss:$8 sps:$4 sm:$0xff]  }
   0x3   :  { %664 = vmatpush1.bf16.msra.mxu0 %v1599_v1  ;;  %704 = vmatprep.subr.bf16.mxu1 %v1600_v2  ;;  %v1606_v6 = vld [vmem:[%s2325_s1 + $0x164] ss:$8 sps:$4 sm:$0xff]   ;;  %v1608_v7 = vld [vmem:[%s2325_s1 + $0x160] ss:$8 sps:$4 sm:$0xff]   ;;  %v1609_v8 = vld [vmem:[%s2325_s1 + $0x54] ss:$8 sps:$4 sm:$0xff]  }
   0x4   :  { %705 = vmatpush1.bf16.msra.mxu1 %v1602_v3  ;;  %665 = vmatprep.subr.bf16.mxu0 %v1603_v4  ;;  %v1611_v9 = vld [vmem:[%s2325_s1 + $0x50] ss:$8 sps:$4 sm:$0xff]   ;;  %v1612_v10 = vld [vmem:[%s2325_s1 + $0x154] ss:$8 sps:$4 sm:$0xff]   ;;  %v1615_v11 = vld [vmem:[%s2325_s1 + $0x44] ss:$8 sps:$4 sm:$0xff]  }
   0x5   :  { %706 = vmatprep.subr.bf16.mxu1 %v1606_v6  ;;  %v1614_v12 = vld [vmem:[%s2325_s1 + $0x150] ss:$8 sps:$4 sm:$0xff]   ;;  %v1618_v13 = vld [vmem:[%s2325_s1 + $0x144] ss:$8 sps:$4 sm:$0xff]   ;;  %v1617_v14 = vld [vmem:[%s2325_s1 + $0x40] ss:$8 sps:$4 sm:$0xff]  }
   0x6   :  { %v1621_v15 = vld [vmem:[%s2325_s1 + $0x34] ss:$8 sps:$4 sm:$0xff]   ;;  %v1620_v16 = vld [vmem:[%s2325_s1 + $0x140] ss:$8 sps:$4 sm:$0xff]   ;;  %v1623_v18 = vld [vmem:[%s2325_s1 + $0x30] ss:$8 sps:$4 sm:$0xff]  }
   0x7   :  { %666 = vmatpush1.bf16.msra.mxu0 %v1605_v5  ;;  %v1624_v17 = vld [vmem:[%s2325_s1 + $0x134] ss:$8 sps:$4 sm:$0xff]   ;;  %v1627_v19 = vld [vmem:[%s2325_s1 + $0x24] ss:$8 sps:$4 sm:$0xff]   ;;  %v1626_v20 = vld [vmem:[%s2325_s1 + $0x130] ss:$8 sps:$4 sm:$0xff]  }
   0x8   :  { %667 = vmatprep.subr.bf16.mxu0 %v1609_v8  ;;  %707 = vmatpush1.bf16.msra.mxu1 %v1608_v7  ;;  %v1630_v21 = vld [vmem:[%s2325_s1 + $0x124] ss:$8 sps:$4 sm:$0xff]   ;;  %v1629_v22 = vld [vmem:[%s2325_s1 + $0x20] ss:$8 sps:$4 sm:$0xff]   ;;  %v1633_v23 = vld [vmem:[%s2325_s1 + $0x14] ss:$8 sps:$4 sm:$0xff]  }
   0x9   :  { %708 = vmatprep.subr.bf16.mxu1 %v1612_v10  ;;  %v1632_v24 = vld [vmem:[%s2325_s1 + $0x120] ss:$8 sps:$4 sm:$0xff]   ;;  %v1636_v25 = vld [vmem:[%s2325_s1 + $0x114] ss:$8 sps:$4 sm:$0xff]   ;;  %v1635_v26 = vld [vmem:[%s2325_s1 + $0x10] ss:$8 sps:$4 sm:$0xff]  }
   0xa   :  { %v1639_v27 = vld [vmem:[%s2325_s1 + $0x4] ss:$8 sps:$4 sm:$0xff]   ;;  %v1638_v28 = vld [vmem:[%s2325_s1 + $0x110] ss:$8 sps:$4 sm:$0xff]   ;;  %v1641_v30 = vld [vmem:[%s2325_s1] ss:$8 sps:$4 sm:$0xff]  }
   0xb   :  { %668 = vmatpush1.bf16.msra.mxu0 %v1611_v9  ;;  %v1642_v29 = vld [vmem:[%s2325_s1 + $0x104] ss:$8 sps:$4 sm:$0xff]   ;;  %v1645_v31 = vld [vmem:[%s2325_s1 + $0xf4] ss:$8 sps:$4 sm:$0xff]   ;;  %v1644_v32 = vld [vmem:[%s2325_s1 + $0x100] ss:$8 sps:$4 sm:$0xff]  }
   0xc   :  { %669 = vmatprep.subr.bf16.mxu0 %v1615_v11  ;;  %709 = vmatpush1.bf16.msra.mxu1 %v1614_v12  ;;  %v1648_v33 = vld [vmem:[%s2325_s1 + $0x1f4] ss:$8 sps:$4 sm:$0xff]   ;;  %v1647_v34 = vld [vmem:[%s2325_s1 + $0xf0] ss:$8 sps:$4 sm:$0xff]   ;;  %v1651_v35 = vld [vmem:[%s2325_s1 + $0xe4] ss:$8 sps:$4 sm:$0xff]  }
   0xd   :  { %710 = vmatprep.subr.bf16.mxu1 %v1618_v13  ;;  %v1650_v36 = vld [vmem:[%s2325_s1 + $0x1f0] ss:$8 sps:$4 sm:$0xff]   ;;  %v1654_v37 = vld [vmem:[%s2325_s1 + $0x1e4] ss:$8 sps:$4 sm:$0xff]   ;;  %v1653_v38 = vld [vmem:[%s2325_s1 + $0xe0] ss:$8 sps:$4 sm:$0xff]  }
   0xe   :  { %v1657_v39 = vld [vmem:[%s2325_s1 + $0xd4] ss:$8 sps:$4 sm:$0xff]   ;;  %v1656_v40 = vld [vmem:[%s2325_s1 + $0x1e0] ss:$8 sps:$4 sm:$0xff]   ;;  %v1659_v42 = vld [vmem:[%s2325_s1 + $0xd0] ss:$8 sps:$4 sm:$0xff]  }
   0xf   :  { %670 = vmatpush1.bf16.msra.mxu0 %v1617_v14  ;;  %v1660_v41 = vld [vmem:[%s2325_s1 + $0x1d4] ss:$8 sps:$4 sm:$0xff]   ;;  %v1663_v43 = vld [vmem:[%s2325_s1 + $0xc4] ss:$8 sps:$4 sm:$0xff]   ;;  %v1662_v44 = vld [vmem:[%s2325_s1 + $0x1d0] ss:$8 sps:$4 sm:$0xff]  }
  0x10   :  { %671 = vmatprep.subr.bf16.mxu0 %v1621_v15  ;;  %711 = vmatpush1.bf16.msra.mxu1 %v1620_v16  ;;  %v1666_v45 = vld [vmem:[%s2325_s1 + $0x1c4] ss:$8 sps:$4 sm:$0xff]   ;;  %v1665_v47 = vld [vmem:[%s2325_s1 + $0xc0] ss:$8 sps:$4 sm:$0xff]   ;;  %v1669_v49 = vld [vmem:[%s2325_s1 + $0xb4] ss:$8 sps:$4 sm:$0xff]  }
  0x11   :  { %712 = vmatprep.subr.bf16.mxu1 %v1624_v17  ;;  %v51_v46 = vld [vmem:[%s2326_s0] sm:$0xff]  ;;  %v52_v50 = vld [vmem:[%s2326_s0 + $0x8] sm:$0xff]  ;;  %v1672_v53 = vld [vmem:[%s2325_s1 + $0x1b4] ss:$8 sps:$4 sm:$0xff]   ;;  %vm1307_vm4 = vcmask 1041408   ;;  %vm1303_vm5 = vcmask 31744  }
  0x12   :  { %v1358_v48 = vcombine.high %v51_v46, %v51_v46  ;;  %v1668_v51 = vld [vmem:[%s2325_s1 + $0x1c0] ss:$8 sps:$4 sm:$0xff]   ;;  %v1360_v52 = vcombine.high %v52_v50, %v52_v50  ;;  %v1671_v54 = vld [vmem:[%s2325_s1 + $0xb0] ss:$8 sps:$4 sm:$0xff]   ;;  %v1675_v55 = vld [vmem:[%s2325_s1 + $0xa4] ss:$8 sps:$4 sm:$0xff]   ;;  %v1357_v5 = vcombine.low %v51_v46, %v51_v46  ;;  %v1359_v7 = vcombine.low %v52_v50, %v52_v50 }
  0x13   :  { %672 = vmatpush1.bf16.msra.mxu0 %v1623_v18  ;;  %v1674_v56 = vld [vmem:[%s2325_s1 + $0x1b0] ss:$8 sps:$4 sm:$0xff]   ;;  %v1678_v57 = vld [vmem:[%s2325_s1 + $0x1a4] ss:$8 sps:$4 sm:$0xff]   ;;  %v1677_v58 = vld [vmem:[%s2325_s1 + $0xa0] ss:$8 sps:$4 sm:$0xff]  }
  0x14   :  { %673 = vmatprep.subr.bf16.mxu0 %v1627_v19  ;;  %713 = vmatpush1.bf16.msra.mxu1 %v1626_v20  ;;  %v1681_v59 = vld [vmem:[%s2325_s1 + $0x94] ss:$8 sps:$4 sm:$0xff]   ;;  %v1680_v60 = vld [vmem:[%s2325_s1 + $0x1a0] ss:$8 sps:$4 sm:$0xff]   ;;  %v1683_v62 = vld [vmem:[%s2325_s1 + $0x90] ss:$8 sps:$4 sm:$0xff]  }
  0x15   :  { %714 = vmatprep.subr.bf16.mxu1 %v1630_v21  ;;  %695 = vmatprep.mubr.bf16.mxu0 %v1358_v48  ;;  %v1684_v61 = vld [vmem:[%s2325_s1 + $0x194] ss:$8 sps:$4 sm:$0xff]   ;;  %v1687_v63 = vld [vmem:[%s2325_s1 + $0x84] ss:$8 sps:$4 sm:$0xff]   ;;  %v1686_v0 = vld [vmem:[%s2325_s1 + $0x190] ss:$8 sps:$4 sm:$0xff]  }
  0x16   :  { %736 = vmatprep.mubr.bf16.mxu1 %v1360_v52  ;;  %v1690_v1 = vld [vmem:[%s2325_s1 + $0x184] ss:$8 sps:$4 sm:$0xff]   ;;  %v1689_v2 = vld [vmem:[%s2325_s1 + $0x80] ss:$8 sps:$4 sm:$0xff]   ;;  %v1697_v3 = vld [vmem:[%s2325_s1 + $0x274] ss:$8 sps:$4 sm:$0xff]  }
  0x17   :  { %674 = vmatpush1.bf16.msra.mxu0 %v1629_v22  ;;  %v1694_v4 = vld [vmem:[%s2325_s1 + $0x180] ss:$8 sps:$4 sm:$0xff]   ;;  %v1695_v6 = vld [vmem:[%s2325_s1 + $0x270] ss:$8 sps:$4 sm:$0xff]   ;;  %v1702_v8 = vld [vmem:[%s2325_s1 + $0x264] ss:$8 sps:$4 sm:$0xff]  }
  0x18   :  { %675 = vmatprep.subr.bf16.mxu0 %v1633_v23  ;;  %715 = vmatpush1.bf16.msra.mxu1 %v1632_v24  ;;  %v2086_v9 = vld [vmem:[%s2326_s0 + $0x10] sm:$0xff]  ;;  %v1700_v11 = vld [vmem:[%s2325_s1 + $0x260] ss:$8 sps:$4 sm:$0xff]   ;;  %v1708_v14 = vld [vmem:[%s2325_s1 + $0x244] ss:$8 sps:$4 sm:$0xff]  }
  0x19   :  { %716 = vmatprep.subr.bf16.mxu1 %v1636_v25  ;;  %v1362_v10 = vcombine.high %v2086_v9, %v2086_v9  ;;  %v1705_v12 = vld [vmem:[%s2325_s1 + $0x254] ss:$8 sps:$4 sm:$0xff]   ;;  %v1703_v13 = vld [vmem:[%s2325_s1 + $0x250] ss:$8 sps:$4 sm:$0xff]   ;;  %v1706_v15 = vld [vmem:[%s2325_s1 + $0x240] ss:$8 sps:$4 sm:$0xff]  }
  0x1a   :  { %v1711_v16 = vld [vmem:[%s2325_s1 + $0x234] ss:$8 sps:$4 sm:$0xff]   ;;  %v1709_v17 = vld [vmem:[%s2325_s1 + $0x230] ss:$8 sps:$4 sm:$0xff]   ;;  %v1714_v18 = vld [vmem:[%s2325_s1 + $0x224] ss:$8 sps:$4 sm:$0xff]  }
  0x1b   :  { %676 = vmatpush1.bf16.msra.mxu0 %v1635_v26  ;;  %v1712_v19 = vld [vmem:[%s2325_s1 + $0x220] ss:$8 sps:$4 sm:$0xff]   ;;  %v1717_v20 = vld [vmem:[%s2325_s1 + $0x214] ss:$8 sps:$4 sm:$0xff]   ;;  %v1715_v21 = vld [vmem:[%s2325_s1 + $0x210] ss:$8 sps:$4 sm:$0xff]  }
  0x1c   :  { %677 = vmatprep.subr.bf16.mxu0 %v1639_v27  ;;  %717 = vmatpush1.bf16.msra.mxu1 %v1638_v28  ;;  %v1720_v22 = vld [vmem:[%s2325_s1 + $0x204] ss:$8 sps:$4 sm:$0xff]   ;;  %v1718_v23 = vld [vmem:[%s2325_s1 + $0x200] ss:$8 sps:$4 sm:$0xff]   ;;  %v1723_v24 = vld [vmem:[%s2325_s1 + $0x2f4] ss:$8 sps:$4 sm:$0xff]  }
  0x1d   :  { %718 = vmatprep.subr.bf16.mxu1 %v1642_v29  ;;  %v1721_v25 = vld [vmem:[%s2325_s1 + $0x2f0] ss:$8 sps:$4 sm:$0xff]   ;;  %v1726_v26 = vld [vmem:[%s2325_s1 + $0x2e4] ss:$8 sps:$4 sm:$0xff]   ;;  %v1724_v27 = vld [vmem:[%s2325_s1 + $0x2e0] ss:$8 sps:$4 sm:$0xff]  }
  0x1e   :  { %v1729_v28 = vld [vmem:[%s2325_s1 + $0x2d4] ss:$8 sps:$4 sm:$0xff]   ;;  %v1727_v29 = vld [vmem:[%s2325_s1 + $0x2d0] ss:$8 sps:$4 sm:$0xff]   ;;  %v1752_v46 = vld [vmem:[%s2327_s3 + $0x28] sm:$0xff]  }
  0x1f   :  { %678 = vmatpush1.bf16.msra.mxu0 %v1641_v30  ;;  %v1732_v30 = vld [vmem:[%s2325_s1 + $0x2c4] ss:$8 sps:$4 sm:$0xff]   ;;  %v1756_v50 = vld [vmem:[%s2327_s3 + $0x18] sm:$0xff]   ;;  %v1758_v52 = vld [vmem:[%s2327_s3 + $0x10] sm:$0xff]  }
  0x20   :  { %679 = vmatprep.subr.bf16.mxu0 %v1645_v31  ;;  %719 = vmatpush1.bf16.msra.mxu1 %v1644_v32  ;;  %v1730_v31 = vld [vmem:[%s2325_s1 + $0x2c0] ss:$8 sps:$4 sm:$0xff]   ;;  %v1735_v32 = vld [vmem:[%s2325_s1 + $0x2b4] ss:$8 sps:$4 sm:$0xff]  }
  0x21   :  { %720 = vmatprep.subr.bf16.mxu1 %v1648_v33  ;;  %v1733_v33 = vld [vmem:[%s2325_s1 + $0x2b0] ss:$8 sps:$4 sm:$0xff]   ;;  %v1754_v48 = vld [vmem:[%s2327_s3 + $0x20] sm:$0xff]  }
  0x23   :  { %680 = vmatpush2.bf16.msra.mxu0 %v1647_v34  ;;  %v1738_v34 = vld [vmem:[%s2325_s1 + $0x2a4] ss:$8 sps:$4 sm:$0xff]  }
  0x24   :  { %681 = vmatprep.subr.bf16.mxu0 %v1651_v35  ;;  %721 = vmatpush2.bf16.msra.mxu1 %v1650_v36  ;;  %v1736_v35 = vld [vmem:[%s2325_s1 + $0x2a0] ss:$8 sps:$4 sm:$0xff]   ;;  %v1741_v36 = vld [vmem:[%s2325_s1 + $0x294] ss:$8 sps:$4 sm:$0xff]  }
  0x25   :  { %722 = vmatprep.subr.bf16.mxu1 %v1654_v37  ;;  %v1739_v37 = vld [vmem:[%s2325_s1 + $0x290] ss:$8 sps:$4 sm:$0xff]  }
  0x27   :  { %682 = vmatpush2.bf16.msra.mxu0 %v1653_v38  ;;  %v1744_v38 = vld [vmem:[%s2325_s1 + $0x284] ss:$8 sps:$4 sm:$0xff]  }
  0x28   :  { %683 = vmatprep.subr.bf16.mxu0 %v1657_v39  ;;  %723 = vmatpush2.bf16.msra.mxu1 %v1656_v40  ;;  %v1742_v39 = vld [vmem:[%s2325_s1 + $0x280] ss:$8 sps:$4 sm:$0xff]   ;;  %v1361_v40 = vcombine.low %v2086_v9, %v2086_v9 }
  0x29   :  { %724 = vmatprep.subr.bf16.mxu1 %v1660_v41  ;;  %v1747_v41 = vld [vmem:[%s2327_s3 + $0x78] sm:$0xff]  }
  0x2b   :  { %684 = vmatpush2.bf16.msra.mxu0 %v1659_v42  ;;  %v1748_v42 = vld [vmem:[%s2327_s3 + $0x38] sm:$0xff]  }
  0x2c   :  { %685 = vmatprep.subr.bf16.mxu0 %v1663_v43  ;;  %725 = vmatpush2.bf16.msra.mxu1 %v1662_v44  ;;  %v1749_v43 = vld [vmem:[%s2327_s3 + $0x70] sm:$0xff]  }
  0x2d   :  { %726 = vmatprep.subr.bf16.mxu1 %v1666_v45  ;;  %v1750_v44 = vld [vmem:[%s2327_s3 + $0x30] sm:$0xff]   ;;  %v1751_v45 = vld [vmem:[%s2327_s3 + $0x68] sm:$0xff]  }
  0x2f   :  { %686 = vmatpush2.bf16.msra.mxu0 %v1665_v47  ;;  %v1753_v47 = vld [vmem:[%s2327_s3 + $0x60] sm:$0xff]  }
  0x30   :  { %687 = vmatprep.subr.bf16.mxu0 %v1669_v49  ;;  %727 = vmatpush2.bf16.msra.mxu1 %v1668_v51  ;;  %v1755_v49 = vld [vmem:[%s2327_s3 + $0x58] sm:$0xff]   ;;  %v1757_v51 = vld [vmem:[%s2327_s3 + $0x50] sm:$0xff]  }
  0x31   :  { %728 = vmatprep.subr.bf16.mxu1 %v1672_v53  ;;  %v1759_v53 = vld [vmem:[%s2327_s3 + $0x48] sm:$0xff]  }
  0x33   :  { %688 = vmatpush2.bf16.msra.mxu0 %v1671_v54  ;;  %v1760_v54 = vld [vmem:[%s2327_s3 + $0x8] sm:$0xff]  }
  0x34   :  { %689 = vmatprep.subr.bf16.mxu0 %v1675_v55  ;;  %729 = vmatpush2.bf16.msra.mxu1 %v1674_v56  ;;  %v1761_v55 = vld [vmem:[%s2327_s3 + $0x40] sm:$0xff]  }
  0x35   :  { %730 = vmatprep.subr.bf16.mxu1 %v1678_v57  ;;  %v1762_v56 = vld [vmem:[%s2327_s3] sm:$0xff]   ;;  %v1794_v57 = vmov 0.0  }
  0x37   :  { %690 = vmatpush2.bf16.msra.mxu0 %v1677_v58 }
  0x38   :  { %691 = vmatprep.subr.bf16.mxu0 %v1681_v59  ;;  %731 = vmatpush2.bf16.msra.mxu1 %v1680_v60 }
  0x39   :  { %732 = vmatprep.subr.bf16.mxu1 %v1684_v61 }
  0x3b   :  { %692 = vmatpush2.bf16.msra.mxu0 %v1683_v62 }
  0x3c   :  { %693 = vmatprep.subr.bf16.mxu0 %v1687_v63  ;;  %733 = vmatpush2.bf16.msra.mxu1 %v1686_v0 }
  0x3d   :  { %734 = vmatprep.subr.bf16.mxu1 %v1690_v1 }
  0x3f   :  { %694 = vmatpush2.bf16.msra.mxu0 %v1689_v2  ;;  %v152_v2 = vlaneseq }
  0x40   :  { %745 = vmatprep.subr.bf16.mxu0 %v1697_v3  ;;  %735 = vmatpush2.bf16.msra.mxu1 %v1694_v4 }
  0x41   :  { %1500 = vmatprep.subr.bf16.mxu1 %v1747_v41  ;;  %v153_v3 = vshrl.u32 %v152_v2, 7  ;;  %v1772_v41 = vld [vmem:[%s2331_s7 + $0x10] sm:$0xff]  }
  0x42   :  { %696 = vmatmul.mubr.bf16.vlgmr.msra.gmra.mxu0 %v1357_v5  ;;  %v150_v5 = vld [vmem:[%s2329_s2] sm:$0x3] }
  0x43   :  { %746 = vmatpush1.bf16.msra.mxu0 %v1695_v6  ;;  %777 = vmatprep.mubr.bf16.mxu0 %v1362_v10  ;;  %v154_v4 = vsub.s32 0, %v153_v3  ;;  %v158_v6 = vsub.s32 1, %v153_v3 }
  0x44   :  { %737 = vmatmul.mubr.bf16.vlgmr.msra.gmra.mxu1 %v1359_v7  ;;  %747 = vmatprep.subr.bf16.mxu0 %v1702_v8 }
  0x45   :  { %1501 = vmatpush3.bf16.msra.mxu1 %v1748_v42  ;;  %v155_v7 = vrot.slane %v150_v5, %v154_v4  ;;  %v159_v8 = vrot.slane %v150_v5, %v158_v6  ;;  %v1773_v42 = vld [vmem:[%s2331_s7 + $0x8] sm:$0xff]  }
  0x46   :  { %1502 = vmatprep.subr.bf16.mxu1 %v1749_v43  ;;  %v1774_v43 = vld [vmem:[%s2331_s7] sm:$0xff]  }
  0x47   :  { %748 = vmatpush1.bf16.msra.mxu0 %v1700_v11 }
  0x48   :  { %749 = vmatprep.subr.bf16.mxu0 %v1705_v12 }
  0x49   :  { %1503 = vmatpush3.bf16.msra.mxu1 %v1750_v44  ;;  %v1476_v44 = vld [vmem:[%s2332_s6] ss:$0 sm:$0xff] }
  0x4a   :  { %1504 = vmatprep.subr.bf16.mxu1 %v1751_v45 }
  0x4b   :  { %750 = vmatpush1.bf16.msra.mxu0 %v1703_v13 }
  0x4c   :  { %751 = vmatprep.subr.bf16.mxu0 %v1708_v14 }
  0x4d   :  { %1505 = vmatpush3.bf16.msra.mxu1 %v1752_v46 }
  0x4e   :  { %1506 = vmatprep.subr.bf16.mxu1 %v1753_v47 }
  0x4f   :  { %752 = vmatpush1.bf16.msra.mxu0 %v1706_v15 }
  0x50   :  { %753 = vmatprep.subr.bf16.mxu0 %v1711_v16 }
  0x51   :  { %1507 = vmatpush3.bf16.msra.mxu1 %v1754_v48 }
  0x52   :  { %1508 = vmatprep.subr.bf16.mxu1 %v1755_v49 }
  0x53   :  { %754 = vmatpush1.bf16.msra.mxu0 %v1709_v17 }
  0x54   :  { %755 = vmatprep.subr.bf16.mxu0 %v1714_v18 }
  0x55   :  { %1509 = vmatpush3.bf16.msra.mxu1 %v1756_v50 }
  0x56   :  { %1510 = vmatprep.subr.bf16.mxu1 %v1757_v51 }
  0x57   :  { %756 = vmatpush1.bf16.msra.mxu0 %v1712_v19 }
  0x58   :  { %757 = vmatprep.subr.bf16.mxu0 %v1717_v20 }
  0x59   :  { %1511 = vmatpush3.bf16.msra.mxu1 %v1758_v52  ;;  %v1775_v52 = vld [vmem:[%s2333_s9 + $0x8] sm:$0xff]  }
  0x5a   :  { %1512 = vmatprep.subr.bf16.mxu1 %v1759_v53  ;;  %v1776_v53 = vld [vmem:[%s2333_s9] sm:$0xff]  }
  0x5b   :  { %758 = vmatpush1.bf16.msra.mxu0 %v1715_v21 }
  0x5c   :  { %759 = vmatprep.subr.bf16.mxu0 %v1720_v22  ;;  %v1763_v22 = vld [vmem:[%s2328_s5 + $0x38] sm:$0xff]  }
  0x5d   :  { %1513 = vmatpush3.bf16.msra.mxu1 %v1760_v54  ;;  %v1485_v54 = vld [vmem:[%s2334_s8] ss:$0 sm:$0xff] }
  0x5e   :  { %1514 = vmatprep.subr.bf16.mxu1 %v1761_v55 }
  0x5f   :  { %760 = vmatpush1.bf16.msra.mxu0 %v1718_v23 }
  0x60   :  { %761 = vmatprep.subr.bf16.mxu0 %v1723_v24  ;;  %v1764_v24 = vld [vmem:[%s2328_s5 + $0x30] sm:$0xff]  }
  0x61   :  { %1515 = vmatpush3.bf16.msra.mxu1 %v1762_v56 }
  0x62   :  { %1543 = vmatprep.subr.bf16.mxu1 %v1794_v57 }
  0x63   :  { %762 = vmatpush2.bf16.msra.mxu0 %v1721_v25  ;;  %v1765_v25 = vld [vmem:[%s2328_s5 + $0x28] sm:$0xff]  }
  0x64   :  { %763 = vmatprep.subr.bf16.mxu0 %v1726_v26  ;;  %v1766_v26 = vld [vmem:[%s2328_s5 + $0x20] sm:$0xff]  }
  0x67   :  { %764 = vmatpush2.bf16.msra.mxu0 %v1724_v27  ;;  %v1767_v27 = vld [vmem:[%s2328_s5 + $0x18] sm:$0xff]  }
  0x68   :  { %765 = vmatprep.subr.bf16.mxu0 %v1729_v28  ;;  %v1768_v28 = vld [vmem:[%s2328_s5 + $0x10] sm:$0xff]  }
  0x6b   :  { %766 = vmatpush2.bf16.msra.mxu0 %v1727_v29  ;;  %v1769_v29 = vld [vmem:[%s2328_s5 + $0x8] sm:$0xff]  }
  0x6c   :  { %767 = vmatprep.subr.bf16.mxu0 %v1732_v30  ;;  %v1770_v30 = vld [vmem:[%s2328_s5] sm:$0xff]  }
  0x6f   :  { %768 = vmatpush2.bf16.msra.mxu0 %v1730_v31 }
  0x70   :  { %769 = vmatprep.subr.bf16.mxu0 %v1735_v32  ;;  %v1459_v32 = vld [vmem:[%s2330_s4] ss:$0 sm:$0xff] }
  0x73   :  { %770 = vmatpush2.bf16.msra.mxu0 %v1733_v33 }
  0x74   :  { %771 = vmatprep.subr.bf16.mxu0 %v1738_v34 }
  0x77   :  { %772 = vmatpush2.bf16.msra.mxu0 %v1736_v35 }
  0x78   :  { %773 = vmatprep.subr.bf16.mxu0 %v1741_v36 }
  0x7b   :  { %774 = vmatpush2.bf16.msra.mxu0 %v1739_v37 }
  0x7c   :  { %775 = vmatprep.subr.bf16.mxu0 %v1744_v38 }
  0x7f   :  { %776 = vmatpush2.bf16.msra.mxu0 %v1742_v39 }
  0x80   :  { %1563 = vmatprep.subr.bf16.mxu0 %v1794_v57 }
  0x82   :  { %778 = vmatmul.mubr.bf16.vlgmr.msra.gmra.mxu0 %v1361_v40  ;;  %v1771_v40 = vld [vmem:[%s2331_s7 + $0x18] sm:$0xff]  }
  0x83   :  { %1571 = vmatprep.mubr.msk.bf16.mxu0 %vm1795_vm0, %v1794_v57  ;;  %1564 = vmatpush3.bf16.msra.mxu0 %v1771_v40 }
  0x84   :  { %1565 = vmatprep.subr.bf16.mxu0 %v1794_v57 }
  0x87   :  { %1566 = vmatpush3.bf16.msra.mxu0 %v1772_v41 }
  0x88   :  { %1567 = vmatprep.subr.bf16.mxu0 %v1794_v57 }
  0x8b   :  { %1568 = vmatpush3.bf16.msra.mxu0 %v1773_v42 }
  0x8c   :  { %1569 = vmatprep.subr.bf16.mxu0 %v1794_v57 }
  0x8f   :  { %1570 = vmatpush3.bf16.msra.mxu0 %v1774_v43 }
  0x90   :  { %1589 = vmatprep.subr.bf16.mxu0 %v1794_v57 }
 0x102   :  { %v697_v58 = vpop.f32.mrf.mxu0 }
 0x103   :  { %v698_v9 = vadd.f32 %v697_v58, %v155_v7 }
 0x104   :  { %v699_v59 = vpop.f32.mrf.mxu0  ;;  %v738_v60 = vpop.f32.mrf.mxu1 }
 0x105   :  { %v700_v10 = vadd.f32 %v699_v59, %v159_v8  ;;  %v739_v11 = vadd.f32 %v738_v60, %v698_v9  ;;  %v1495_v9 = vld [vmem:[%s2338_s12] ss:$0 sm:$0xff] }
 0x106   :  { %v701_v61 = vpop.f32.mrf.mxu0  ;;  %v740_v62 = vpop.f32.mrf.mxu1 }
 0x107   :  { %v741_v13 = vadd.f32 %v740_v62, %v700_v10 }
 0x108   :  { %v702_v63 = vpop.f32.mrf.mxu0  ;;  %v742_v0 = vpop.f32.mrf.mxu1 }
 0x109   :  { %v1777_v63 = vld [vmem:[%s2335_s11] sm:$0xff]  }
 0x10a   :  { %v743_v1 = vpop.f32.mrf.mxu1  ;;  %v1491_v0 = vld [vmem:[%s2336_s10] ss:$0 sm:$0xff] }
 0x142   :  { %v779_v12 = vpop.f32.mrf.mxu0 }
 0x143   :  { %v780_v14 = vadd.f32 %v779_v12, %v739_v11 }
 0x144   :  { %v781_v15 = vpop.f32.mrf.mxu0 }
 0x145   :  { %v782_v16 = vadd.f32 %v781_v15, %v741_v13  ;;  %1778 = vtanh.f32 %v780_v14 }
 0x146   :  { %v783_v17 = vpop.f32.mrf.mxu0 }
 0x147   :  { %1780 = vtanh.f32 %v782_v16  ;;  %v1498_v17 = vld [vmem:[%s2339_s14] ss:$0 sm:$0xff] }
 0x148   :  { %v784_v18 = vpop.f32.mrf.mxu0 }
 0x152   :  { %v1779_v19 = vpop.eup %1778 }
 0x153   :  { %v821_v23 = vpack.c.bf16 %v1779_v19, %v1779_v19 }
 0x154   :  { %v1781_v20 = vpop.eup %1780 }
 0x155   :  { %v822_v21 = vpack.c.bf16 %v1781_v20, %v1781_v20 }
 0x157   :  { %957 = vmatprep.mubr.bf16.mxu1 %v822_v21 }
 0x158   :  { %958 = vmatmul.mubr.bf16.vlgmr.msra.gmra.mxu1 %v821_v23 }
 0x159   :  { %1544 = vmatpush3.bf16.msra.mxu1 %v1763_v22  ;;  %1559 = vmatprep.mubr.msk.bf16.mxu1 %vm1795_vm0, %v1794_v57 }
 0x15a   :  { %1545 = vmatprep.subr.bf16.mxu1 %v1794_v57 }
 0x15d   :  { %1546 = vmatpush3.bf16.msra.mxu1 %v1764_v24 }
 0x15e   :  { %1547 = vmatprep.subr.bf16.mxu1 %v1794_v57 }
 0x161   :  { %1548 = vmatpush3.bf16.msra.mxu1 %v1765_v25 }
 0x162   :  { %1549 = vmatprep.subr.bf16.mxu1 %v1794_v57 }
 0x165   :  { %1550 = vmatpush3.bf16.msra.mxu1 %v1766_v26 }
 0x166   :  { %1551 = vmatprep.subr.bf16.mxu1 %v1794_v57 }
 0x169   :  { %1552 = vmatpush3.bf16.msra.mxu1 %v1767_v27 }
 0x16a   :  { %1553 = vmatprep.subr.bf16.mxu1 %v1794_v57 }
 0x16d   :  { %1554 = vmatpush3.bf16.msra.mxu1 %v1768_v28 }
 0x16e   :  { %1555 = vmatprep.subr.bf16.mxu1 %v1794_v57 }
 0x171   :  { %1556 = vmatpush3.bf16.msra.mxu1 %v1769_v29 }
 0x172   :  { %1557 = vmatprep.subr.bf16.mxu1 %v1794_v57 }
 0x175   :  { %1558 = vmatpush3.bf16.msra.mxu1 %v1770_v30 }
 0x176   :  { %1575 = vmatprep.subr.bf16.mxu1 %v1794_v57 }
 0x218   :  { %v1516_v31 = vpop.f32.mrf.mxu1 }
 0x21a   :  { %v1517_v33 = vpop.f32.mrf.mxu1 }
 0x21b   :  { %v1518_v34 = vadd.f32 %v1517_v33, %v1516_v31 }
 0x21c   :  { %v1519_v35 = vpop.f32.mrf.mxu1 }
 0x21d   :  { %v960_v36 = vadd.f32 %v1518_v34, %v1459_v32 }
 0x21e   :  { %v1520_v37 = vpop.f32.mrf.mxu1 }
 0x21f   :  { %1782 = vtanh.f32 %v960_v36 }
 0x22c   :  { %v1783_v38 = vpop.eup %1782 }
 0x22d   :  { %v983_v39 = vpack.c.bf16 %v1783_v38, %v1783_v38 }
 0x22f   :  { %1560 = vmatmul.mubr.bf16.vlgmr.msra.gmra.mxu1 %v983_v39 }
 0x230   :  { %1579 = vmatprep.mubr.msk.bf16.mxu1 %vm1795_vm0, %v1794_v57  ;;  %1576 = vmatpush3.bf16.msra.mxu1 %v1775_v52 }
 0x231   :  { %1577 = vmatprep.subr.bf16.mxu1 %v1794_v57 }
 0x234   :  { %1578 = vmatpush3.bf16.msra.mxu1 %v1776_v53 }
 0x235   :  { %1583 = vmatprep.subr.bf16.mxu1 %v1794_v57 }
 0x2ef   :  { %v1072_v45 = vpop.f32.mrf.mxu1 }
 0x2f0   :  { %v1073_v46 = vadd.f32 %v1476_v44, %v1072_v45 }
 0x2f1   :  { %v1561_v47 = vpop.f32.mrf.mxu1 }
 0x2f2   :  { %1784 = vtanh.f32 %v1073_v46 }
 0x2f3   :  { %v1075_v48 = vpop.f32.mrf.mxu1 }
 0x2f5   :  { %v1562_v49 = vpop.f32.mrf.mxu1 }
 0x2ff   :  { %v1785_v50 = vpop.eup %1784 }
 0x300   :  { %v1088_v51 = vpack.c.bf16 %v1785_v50, %v1785_v50 }
 0x302   :  { %1572 = vmatmul.mubr.msk.bf16.vlgmr.msra.gmra.mxu0 %vm1119_vm1, %v1088_v51 }
 0x303   :  { %1591 = vmatprep.mubr.msk.bf16.mxu0 %vm1795_vm0, %v1794_v57 }
 0x3c2   :  { %v1157_v55 = vpop.f32.mrf.mxu0 }
 0x3c3   :  { %v1158_v56 = vadd.f32 %v1485_v54, %v1157_v55 }
 0x3c4   :  { %v1573_v58 = vpop.f32.mrf.mxu0 }
 0x3c5   :  { %1786 = vtanh.f32 %v1158_v56 }
 0x3c6   :  { %v1160_v59 = vpop.f32.mrf.mxu0 }
 0x3c8   :  { %v1574_v60 = vpop.f32.mrf.mxu0 }
 0x3d2   :  { %v1787_v61 = vpop.eup %1786 }
 0x3d3   :  { %v1169_v62 = vpack.c.bf16 %v1787_v61, %v1787_v61 }
 0x3d5   :  { %1580 = vmatmul.mubr.msk.bf16.vlgmr.msra.gmra.mxu1 %vm1188_vm2, %v1169_v62 }
 0x3d6   :  { %1585 = vmatprep.mubr.msk.bf16.mxu1 %vm1795_vm0, %v1794_v57  ;;  %1584 = vmatpush3.bf16.msra.mxu1 %v1777_v63  ;;  %v1294_v57 = vld [vmem:[%s2337_s13] sm:$0x3] }
 0x3d7   :  { %v1309_v8 = vsel %vm1307_vm4, %v1294_v57, 0 }
 0x3d8   :  { %1590 = vmatpush3.bf16.msra.mxu0 %v1309_v8 }
 0x495   :  { %v1226_v1 = vpop.f32.mrf.mxu1 }
 0x496   :  { %v1227_v2 = vadd.f32 %v1491_v0, %v1226_v1 }
 0x497   :  { %v1581_v3 = vpop.f32.mrf.mxu1 }
 0x498   :  { %1788 = vtanh.f32 %v1227_v2 }
 0x499   :  { %v1229_v4 = vpop.f32.mrf.mxu1 }
 0x49b   :  { %v1582_v5 = vpop.f32.mrf.mxu1 }
 0x4a5   :  { %v1789_v6 = vpop.eup %1788 }
 0x4a6   :  { %v1236_v7 = vpack.c.bf16 %v1789_v6, %v1789_v6 }
 0x4a8   :  { %1586 = vmatmul.mubr.msk.bf16.vlgmr.msra.gmra.mxu1 %vm1249_vm3, %v1236_v7 }
 0x568   :  { %v1287_v10 = vpop.f32.mrf.mxu1 }
 0x569   :  { %v1288_v11 = vadd.f32 %v1495_v9, %v1287_v10 }
 0x56a   :  { %v1587_v12 = vpop.f32.mrf.mxu1 }
 0x56b   :  { %1790 = vtanh.f32 %v1288_v11 }
 0x56c   :  { %v1290_v13 = vpop.f32.mrf.mxu1 }
 0x56e   :  { %v1588_v14 = vpop.f32.mrf.mxu1 }
 0x578   :  { %v1791_v15 = vpop.eup %1790 }
 0x579   :  { %v1296_v16 = vpack.c.bf16 %v1791_v15, %v1791_v15 }
 0x57b   :  { %1592 = vmatmul.mubr.msk.bf16.vlgmr.msra.gmra.mxu0 %vm1303_vm5, %v1296_v16 }
 0x63b   :  { %v1345_v18 = vpop.f32.mrf.mxu0 }
 0x63c   :  { %v1346_v19 = vadd.f32 %v1498_v17, %v1345_v18 }
 0x63d   :  { %v1593_v20 = vpop.f32.mrf.mxu0 }
 0x63e   :  { %1792 = vtanh.f32 %v1346_v19 }
 0x63f   :  { %v1348_v21 = vpop.f32.mrf.mxu0 }
 0x641   :  { %v1594_v22 = vpop.f32.mrf.mxu0 }
 0x64b   :  { %v1793_v23 = vpop.eup %1792 }
 0x64c   :  { %1352 = vst [vmem:[%s2340_s15] sm:$0xff] %v1793_v23 }

</bundles_post_ra>
